<compile_context>
chip_gen: v5e
topology: v5e:2x2
jax: 0.10.0
libtpu: 0.0.40
codegen_flags: <defaults>
</compile_context>

<pallas_src>
import jax
import jax.numpy as jnp
from jax.experimental import pallas as pl
from jax.experimental.pallas import tpu as pltpu

INPUT_SIZE = 16
HIDDEN1 = 64
HIDDEN2 = 32
OUT = 1


def mlp_kernel(xT_ref, w1_ref, b1_ref, w2_ref, b2_ref, w3_ref, b3_ref, o_ref):
    # xT_ref: (F, block_b) f32     w1_ref: (H1, F)  bf16   b1_ref: (H1, 1) f32
    # w2_ref: (H2, H1)     bf16    b2_ref: (H2, 1)  f32
    # w3_ref: (H2, 1)      f32     b3_ref: (1, 1)   f32    o_ref: (1, block_b) f32
    xT = xT_ref[...].astype(jnp.bfloat16)

    # fc1 + ReLU: MXU with bf16 operands, f32 accumulate; elementwise stays f32.
    h1 = jnp.dot(w1_ref[...], xT, preferred_element_type=jnp.float32)      # (H1, TB)
    h1 = jnp.maximum(h1 + b1_ref[...], 0.0)

    # fc2 + ReLU
    h2 = jnp.dot(w2_ref[...], h1.astype(jnp.bfloat16),
                 preferred_element_type=jnp.float32)                       # (H2, TB)
    h2 = jnp.maximum(h2 + b2_ref[...], 0.0)

    # fc3 (output width 1): VPU multiply + cross-sublane reduce instead of an MXU
    # push/pop; the result is already lane-dense (1, block_b).
    y = jnp.sum(h2 * w3_ref[...], axis=0, keepdims=True) + b3_ref[...]     # (1, TB)
    o_ref[...] = y.astype(o_ref.dtype)


def simple_nn_forward(x, params, *, block_b=256):
    """x: (B, F) float32 -> (B, 1) float32 (same semantics as the PyTorch forward)."""
    w1, b1, w2, b2, w3, b3 = params
    B, F = x.shape
    assert block_b % 128 == 0, "batch tile must be lane-dense (multiple of 128)"
    assert F == w1.shape[1]

    b_pad = pl.cdiv(B, block_b) * block_b
    if b_pad != B:
        x = jnp.pad(x, ((0, b_pad - B), (0, 0)))
    # Wrapper-side layout plumbing: put batch along lanes so all layer outputs
    # (including the width-1 final one) are lane-dense inside the kernel.
    xT = x.T                                                   # (F, b_pad)

    grid = (b_pad // block_b,)

    def resident(a):  # full array, same block every step -> stays VMEM-resident
        return pl.BlockSpec(a.shape, lambda i: (0,) * a.ndim)

    out = pl.pallas_call(
        mlp_kernel,
        out_shape=jax.ShapeDtypeStruct((1, b_pad), jnp.float32),
        grid=grid,
        in_specs=[
            pl.BlockSpec((F, block_b), lambda i: (0, i)),      # batch tile of x^T
            resident(w1), resident(b1),
            resident(w2), resident(b2),
            resident(w3), resident(b3),
        ],
        out_specs=pl.BlockSpec((1, block_b), lambda i: (0, i)),  # lane-dense output row
        compiler_params=pltpu.CompilerParams(
            dimension_semantics=("parallel",),                 # megacore sharding on v7x
        ),
    )(xT, w1, b1, w2, b2, w3, b3)

    return out[0, :B][:, None]                                 # (B, 1)


def init_params(key, input_size, h1, h2):
    """PyTorch nn.Linear-style init: U(-1/sqrt(fan_in), 1/sqrt(fan_in)).

    Weights are stored in PyTorch's (out_features, in_features) layout, which is exactly
    what the batch-along-lanes kernel consumes. fc1/fc2 weights are kept in bf16 (MXU
    operands); biases and the fc3 column stay f32.
    """
    ks = jax.random.split(key, 6)

    def linear(kw, kb, fan_in, fan_out):
        bound = 1.0 / (fan_in ** 0.5)
        w = jax.random.uniform(kw, (fan_out, fan_in), jnp.float32, -bound, bound)
        b = jax.random.uniform(kb, (fan_out, 1), jnp.float32, -bound, bound)
        return w, b

    w1, b1 = linear(ks[0], ks[1], input_size, h1)
    w2, b2 = linear(ks[2], ks[3], h1, h2)
    w3, b3 = linear(ks[4], ks[5], h2, OUT)
    # fc3 weight stored as an (h2, 1) column for the in-kernel VPU reduction.
    return (w1.astype(jnp.bfloat16), b1,
            w2.astype(jnp.bfloat16), b2,
            w3.T, b3)


def reference_forward(x, params):
    # Pure-JAX reference with the same precision policy as the kernel
    # (bf16 matmul operands, f32 accumulation/elementwise, f32 fc3 reduction).
    w1, b1, w2, b2, w3, b3 = params
    h1 = jnp.maximum(
        jnp.dot(x.astype(jnp.bfloat16), w1.T, preferred_element_type=jnp.float32) + b1.T,
        0.0)
    h2 = jnp.maximum(
        jnp.dot(h1.astype(jnp.bfloat16), w2.T, preferred_element_type=jnp.float32) + b2.T,
        0.0)
    return jnp.sum(h2 * w3.T, axis=-1, keepdims=True) + b3


if __name__ == "__main__":
    key = jax.random.PRNGKey(0)
    k_x, k_p = jax.random.split(key)

    B = 1000  # deliberately not a multiple of the tile, to exercise batch padding
    x = jax.random.normal(k_x, (B, INPUT_SIZE), dtype=jnp.float32)
    params = init_params(k_p, INPUT_SIZE, HIDDEN1, HIDDEN2)

    fwd = jax.jit(lambda xx, pp: simple_nn_forward(xx, pp, block_b=256))
    out = jax.block_until_ready(fwd(x, params))

    ref = reference_forward(x, params)
    assert out.shape == (B, OUT)
    assert jnp.allclose(out, ref, atol=1e-3, rtol=1e-3), \
        float(jnp.max(jnp.abs(out - ref)))

    print("KERNEL_OK")
</pallas_src>

<mosaic_0001>
module attributes {stable_mosaic.version = 11 : i64} {
  func.func @mlp_kernel(%arg0: i32, %arg1: memref<16x256xf32, #tpu.memory_space<vmem>>, %arg2: memref<64x16xbf16, #tpu.memory_space<vmem>>, %arg3: memref<64x1xf32, #tpu.memory_space<vmem>>, %arg4: memref<32x64xbf16, #tpu.memory_space<vmem>>, %arg5: memref<32x1xf32, #tpu.memory_space<vmem>>, %arg6: memref<32x1xf32, #tpu.memory_space<vmem>>, %arg7: memref<1x1xf32, #tpu.memory_space<vmem>>, %arg8: memref<1x256xf32, #tpu.memory_space<vmem>>) attributes {dimension_semantics = [#tpu.dimension_semantics<parallel>], iteration_bounds = array<i64: 4>, scalar_prefetch = 0 : i64, scratch_operands = 0 : i64, tpu.core_type = #tpu.core_type<tc>, window_params = [{transform_indices = @transform_0, window_bounds = array<i64: 16, 256>}, {pipeline_mode = #tpu.pipeline_mode<synchronous>, transform_indices = @transform_1, window_bounds = array<i64: 64, 16>}, {pipeline_mode = #tpu.pipeline_mode<synchronous>, transform_indices = @transform_2, window_bounds = array<i64: 64, 1>}, {pipeline_mode = #tpu.pipeline_mode<synchronous>, transform_indices = @transform_3, window_bounds = array<i64: 32, 64>}, {pipeline_mode = #tpu.pipeline_mode<synchronous>, transform_indices = @transform_4, window_bounds = array<i64: 32, 1>}, {pipeline_mode = #tpu.pipeline_mode<synchronous>, transform_indices = @transform_5, window_bounds = array<i64: 32, 1>}, {pipeline_mode = #tpu.pipeline_mode<synchronous>, transform_indices = @transform_6, window_bounds = array<i64: 1, 1>}, {transform_indices = @transform_7, window_bounds = array<i64: 1, 256>}]} {
    %c0 = arith.constant 0 : index
    %c0_0 = arith.constant 0 : index
    %0 = vector.load %arg1[%c0, %c0_0] : memref<16x256xf32, #tpu.memory_space<vmem>>, vector<16x256xf32>
    %1 = arith.truncf %0 : vector<16x256xf32> to vector<16x256xbf16>
    %c0_1 = arith.constant 0 : index
    %c0_2 = arith.constant 0 : index
    %2 = vector.load %arg2[%c0_1, %c0_2] : memref<64x16xbf16, #tpu.memory_space<vmem>>, vector<64x16xbf16>
    %cst = arith.constant dense<0.000000e+00> : vector<64x256xf32>
    %3 = tpu.matmul %2, %1, %cst {dimension_numbers = #tpu.dot_dimension_numbers<[1], [0], [0], [1], [0, 0, 1, 1], [], []>} : vector<64x16xbf16>, vector<16x256xbf16>, vector<64x256xf32> -> vector<64x256xf32>
    %c0_3 = arith.constant 0 : index
    %c0_4 = arith.constant 0 : index
    %4 = vector.load %arg3[%c0_3, %c0_4] : memref<64x1xf32, #tpu.memory_space<vmem>>, vector<64x1xf32>
    %5 = vector.broadcast %4 : vector<64x1xf32> to vector<64x256xf32>
    %6 = arith.addf %3, %5 : vector<64x256xf32>
    %cst_5 = arith.constant 0.000000e+00 : f32
    %7 = vector.broadcast %cst_5 : f32 to vector<64x256xf32>
    %8 = arith.maximumf %6, %7 : vector<64x256xf32>
    %c0_6 = arith.constant 0 : index
    %c0_7 = arith.constant 0 : index
    %9 = vector.load %arg4[%c0_6, %c0_7] : memref<32x64xbf16, #tpu.memory_space<vmem>>, vector<32x64xbf16>
    %10 = arith.truncf %8 : vector<64x256xf32> to vector<64x256xbf16>
    %cst_8 = arith.constant dense<0.000000e+00> : vector<32x256xf32>
    %11 = tpu.matmul %9, %10, %cst_8 {dimension_numbers = #tpu.dot_dimension_numbers<[1], [0], [0], [1], [0, 0, 1, 1], [], []>} : vector<32x64xbf16>, vector<64x256xbf16>, vector<32x256xf32> -> vector<32x256xf32>
    %c0_9 = arith.constant 0 : index
    %c0_10 = arith.constant 0 : index
    %12 = vector.load %arg5[%c0_9, %c0_10] : memref<32x1xf32, #tpu.memory_space<vmem>>, vector<32x1xf32>
    %13 = vector.broadcast %12 : vector<32x1xf32> to vector<32x256xf32>
    %14 = arith.addf %11, %13 : vector<32x256xf32>
    %cst_11 = arith.constant 0.000000e+00 : f32
    %15 = vector.broadcast %cst_11 : f32 to vector<32x256xf32>
    %16 = arith.maximumf %14, %15 : vector<32x256xf32>
    %c0_12 = arith.constant 0 : index
    %c0_13 = arith.constant 0 : index
    %17 = vector.load %arg6[%c0_12, %c0_13] : memref<32x1xf32, #tpu.memory_space<vmem>>, vector<32x1xf32>
    %18 = vector.broadcast %17 : vector<32x1xf32> to vector<32x256xf32>
    %19 = arith.mulf %16, %18 : vector<32x256xf32>
    %cst_14 = arith.constant dense<0.000000e+00> : vector<256xf32>
    %20 = vector.multi_reduction <add>, %19, %cst_14 [0] : vector<32x256xf32> to vector<256xf32>
    %21 = vector.shape_cast %20 : vector<256xf32> to vector<1x256xf32>
    %c0_15 = arith.constant 0 : index
    %c0_16 = arith.constant 0 : index
    %22 = vector.load %arg7[%c0_15, %c0_16] : memref<1x1xf32, #tpu.memory_space<vmem>>, vector<1x1xf32>
    %23 = vector.broadcast %22 : vector<1x1xf32> to vector<1x256xf32>
    %24 = arith.addf %21, %23 : vector<1x256xf32>
    %c0_17 = arith.constant 0 : index
    %c0_18 = arith.constant 0 : index
    %25 = vector.load %arg8[%c0_17, %c0_18] : memref<1x256xf32, #tpu.memory_space<vmem>>, vector<1x256xf32>
    tpu.vector_store %arg8[%c0_17, %c0_18], %24 {strides = array<i32>} : memref<1x256xf32, #tpu.memory_space<vmem>>, vector<1x256xf32>,
    return
  }
  func.func @transform_0(%arg0: i32) -> (i32, i32) {
    %c0_i32 = arith.constant 0 : i32
    %c0_i32_0 = arith.constant 0 : i32
    return %c0_i32, %arg0 : i32, i32
  }
  func.func @transform_1(%arg0: i32) -> (i32, i32) {
    %c0_i32 = arith.constant 0 : i32
    %c0_i32_0 = arith.constant 0 : i32
    %c0_i32_1 = arith.constant 0 : i32
    return %c0_i32, %c0_i32_0 : i32, i32
  }
  func.func @transform_2(%arg0: i32) -> (i32, i32) {
    %c0_i32 = arith.constant 0 : i32
    %c0_i32_0 = arith.constant 0 : i32
    %c0_i32_1 = arith.constant 0 : i32
    return %c0_i32, %c0_i32_0 : i32, i32
  }
  func.func @transform_3(%arg0: i32) -> (i32, i32) {
    %c0_i32 = arith.constant 0 : i32
    %c0_i32_0 = arith.constant 0 : i32
    %c0_i32_1 = arith.constant 0 : i32
    return %c0_i32, %c0_i32_0 : i32, i32
  }
  func.func @transform_4(%arg0: i32) -> (i32, i32) {
    %c0_i32 = arith.constant 0 : i32
    %c0_i32_0 = arith.constant 0 : i32
    %c0_i32_1 = arith.constant 0 : i32
    return %c0_i32, %c0_i32_0 : i32, i32
  }
  func.func @transform_5(%arg0: i32) -> (i32, i32) {
    %c0_i32 = arith.constant 0 : i32
    %c0_i32_0 = arith.constant 0 : i32
    %c0_i32_1 = arith.constant 0 : i32
    return %c0_i32, %c0_i32_0 : i32, i32
  }
  func.func @transform_6(%arg0: i32) -> (i32, i32) {
    %c0_i32 = arith.constant 0 : i32
    %c0_i32_0 = arith.constant 0 : i32
    %c0_i32_1 = arith.constant 0 : i32
    return %c0_i32, %c0_i32_0 : i32, i32
  }
  func.func @transform_7(%arg0: i32) -> (i32, i32) {
    %c0_i32 = arith.constant 0 : i32
    %c0_i32_0 = arith.constant 0 : i32
    return %c0_i32, %arg0 : i32, i32
  }
}

</mosaic_0001>

<bundles_post_ra>
// kernel: _lambda_.1
= control target key start
LH: loop header
LB: loop body
LE: loop exit
PB: predicated region body
PF: predicated region fallthrough
CT: control target
= control target key end

     0   :  { %s979_s0 = inlined_call_operand.vmem [shape: f32[16,1024], index: 0, kind: input, shape index: {}]   ;;  %s980_s1 = inlined_call_operand.vmem [shape: bf16[64,16], index: 1, kind: input, shape index: {}]   ;;  %s981_s2 = inlined_call_operand.vmem [shape: f32[64,1], index: 2, kind: input, shape index: {}]   ;;  %s982_s3 = inlined_call_operand.vmem [shape: bf16[32,64], index: 3, kind: input, shape index: {}]   ;;  %s983_s4 = inlined_call_operand.vmem [shape: f32[32,1], index: 4, kind: input, shape index: {}]   ;;  %s984_s5 = inlined_call_operand.vmem [shape: f32[32,1], index: 5, kind: input, shape index: {}]   ;;  %s985_s6 = inlined_call_operand.<no memory space> [shape: f32[1,1], index: 6, kind: input, shape index: {}]   ;;  %s986_s7 = inlined_call_operand.vmem [shape: f32[1,1024], index: 7, kind: output, shape index: {}]  }
   0x1   :  { %v12_v0 = vstv %s985_s6 }
   0x2   :  { %13 = vst [vmem:[#allocation2] sm:$0x1] %v12_v0 }
   0x3   :  { %s853_s26 = smov 0   ;;  %s855_s27 = smov 0  }
   0x4   :  { %s857_s28 = smov 0  }
   0x5 LB: > { %s702_s6 = sadd.s32 4294967295, %s807_s28   ;;  %s870_s29 = sadd.s32 1, %s807_s28   ;;  %s807_s28 = sphi %s857_s28, %s989_s28   ;;  %s803_s27 = sphi %s855_s27, %s988_s27   ;;  %s799_s26 = sphi %s853_s26, %s987_s26  }
   0x6   : > { %s23_s30 = ssub.s32 %s807_s28, %s870_s29  ;;  %s26_s8 = sadd.s32 1, %s803_s27 }
   0x7   : > { %p24_p0 = scmp.eq.s32.totalorder %s23_s30, 0  ;;  %p33_p1 = scmp.ne.s32.totalorder %s803_s27, %s799_s26 }
   0x8   : > { %p34_p2 = scmp.eq.s32.totalorder %s807_s28, 0  ;;  %p705_p4 = scmp.ge.s32.totalorder %s807_s28, 4 }
   0x9   : > { %s879_s9 = scalar_select %p24_p0, %s803_s27, %s26_s8  }
   0xa   : > { %p35_p3 = por %p34_p2, %p33_p1  ;;  %229 = sbr.rel (%p705_p4) target bundleno = 23 (0x17), region = 40 }
   0xf   : > { %232 = sbr.rel (!%p35_p3) target bundleno = 23 (0x17), region = 44  ;;  %s234_s10 = sand.u32 (%p35_p3), 1, %s803_s27  }
  0x10   : > { %s750_s11 = sshll.u32 (%p35_p3), %s807_s28, 4  ;;  %s706_s12 = sshll.u32 (%p35_p3), %s234_s10, 5 }
  0x11   : > { %s239_s15 = scalar_lea.vmem (%p35_p3), %s979_s0, %s750_s11  ;;  %s236_s16 = scalar_lea.vmem (%p35_p3), [#allocation3], %s706_s12 }
  0x12   : > { %v252_v1 = vld [vmem:[%s239_s15] sm:$0xff] (%p35_p3)  ;;  %v254_v2 = vld [vmem:[%s239_s15 + $0x8] sm:$0xff] (%p35_p3) }
  0x13   : > { %v256_v3 = vld [vmem:[%s239_s15 + $0x40] sm:$0xff] (%p35_p3)  ;;  %253 = vst [vmem:[%s236_s16] sm:$0xff] (%p35_p3), %v252_v1  ;;  %v258_v4 = vld [vmem:[%s239_s15 + $0x48] sm:$0xff] (%p35_p3) }
  0x14   : > { %255 = vst [vmem:[%s236_s16 + $0x8] sm:$0xff] %v254_v2 }
  0x15   : > { %257 = vst [vmem:[%s236_s16 + $0x10] sm:$0xff] %v256_v3 }
  0x16   : > { %259 = vst [vmem:[%s236_s16 + $0x18] sm:$0xff] %v258_v4 }
  0x17 PF: > { %p709_p5 = scmp.ge.s32.totalorder %s807_s28, 1  ;;  %p264_p6 = scmp.lt.s32.totalorder %s807_s28, 5 }
  0x19   : > { %p265_p7 = pnand %p709_p5, %p264_p6 }
  0x1a   : > { %s271_s19 = sand.u32 (!%p265_p7), 1, %s799_s26   ;;  %s711_s26 = sshll.u32 (!%p265_p7), %s702_s6, 1 }
  0x1b   : > { %268 = sbr.rel (%p265_p7) target bundleno = 425 (0x1a9), region = 67  ;;  %s710_s20 = sshll.u32 (!%p265_p7), %s271_s19, 5 }
  0x1c   : > { %s273_s23 = scalar_lea.vmem (!%p265_p7), [#allocation3], %s710_s20  ;;  %p303_p8 = scmp.lt.s32.totalorder (!%p265_p7), %s711_s26, 7 }
  0x20   : > { %v328_v5 = vld [vmem:[%s981_s2 + $0x30] sm:$0xff]  ;;  %v809_v6 = vmov 0   ;;  %v326_v7 = vld [vmem:[%s981_s2 + $0x20] sm:$0xff]  ;;  %vm390_vm0 = vcmask 130048   ;;  %v329_v15 = vld [vmem:[%s981_s2 + $0x38] sm:$0xff]  ;;  %vm523_vm1 = vcmask 523264  }
  0x21   : > { %782 = vset.pattern.permute.xlu0 %v809_v6  ;;  %783 = vset.pattern.permute.xlu1 %v809_v6  ;;  %v308_v8 = vld [vmem:[%s273_s23] sm:$0xff]  ;;  %v310_v9 = vld [vmem:[%s273_s23 + $0x10] sm:$0xff]  ;;  %v309_v10 = vld [vmem:[%s273_s23 + $0x8] sm:$0xff]  ;;  %s991_s26 = smov (!%p303_p8, %s711_s26), 7  ;;  %vm638_vm2 = vcmask 1040384  }
  0x22   : > { %362 = vperm.xlu0 %782, %v328_v5   ;;  %352 = vperm.xlu1 %783, %v326_v7   ;;  %v312_v11 = vpack.c.bf16 %v310_v9, %v308_v8  ;;  %v311_v12 = vld [vmem:[%s273_s23 + $0x18] sm:$0xff]  ;;  %v327_v16 = vld [vmem:[%s981_s2 + $0x28] sm:$0xff]  ;;  %v491_v21 = vld [vmem:[%s983_s4 + $0x10] sm:$0xff]  ;;  %s305_s28 = scalar_lea.vmem %s986_s7, %s991_s26 }
  0x23   : > { %784 = vset.pattern.permute.xlu2 %v809_v6  ;;  %v313_v13 = vpack.c.bf16 %v311_v12, %v309_v10  ;;  %v751_v14 = vld [vmem:[%s980_s1] sm:$0xff]  ;;  %v323_v18 = vld [vmem:[%s981_s2 + $0x8] sm:$0xff]  ;;  %v324_v22 = vld [vmem:[%s981_s2 + $0x10] sm:$0xff] }
  0x24   : > { %410 = vmatpush.bf16.msra.mxu0 %v312_v11  ;;  %v322_v17 = vld [vmem:[%s981_s2] sm:$0xff]  ;;  %v752_v19 = vld [vmem:[%s980_s1 + $0x8] sm:$0xff]  ;;  %342 = vperm.xlu2 %784, %v324_v22   ;;  %v325_v25 = vld [vmem:[%s981_s2 + $0x18] sm:$0xff] }
  0x25   : > { %439 = vmatpush.bf16.msra.mxu1 %v313_v13  ;;  %v490_v20 = vld [vmem:[%s983_s4 + $0x8] sm:$0xff]  ;;  %v576_v23 = vld [vmem:[%s984_s5] sm:$0xff]  ;;  %v753_v26 = vld [vmem:[%s980_s1 + $0x10] sm:$0xff] }
  0x26   : > { %v577_v24 = vld [vmem:[%s984_s5 + $0x8] sm:$0xff]  ;;  %v579_v27 = vld [vmem:[%s984_s5 + $0x18] sm:$0xff]  ;;  %v626_v28 = vld [vmem:[#allocation2] sm:$0x1] }
  0x27   : > { %728 = vmatmul.msk.bf16.vlgmr.msra.gmra.mxu0 %vm390_vm0, %v751_v14  ;;  %v489_v29 = vld [vmem:[%s983_s4] sm:$0xff]  ;;  %v492_v30 = vld [vmem:[%s983_s4 + $0x18] sm:$0xff]  ;;  %v578_v32 = vld [vmem:[%s984_s5 + $0x10] sm:$0xff] }
  0x28   : > { %732 = vmatmul.msk.bf16.vlgmr.msra.gmra.mxu1 %vm390_vm0, %v751_v14  ;;  %v754_v31 = vld [vmem:[%s980_s1 + $0x18] sm:$0xff] }
  0x2a   : > { %367 = vperm.xlu0 %782, %v329_v15   ;;  %357 = vperm.xlu1 %783, %v327_v16  }
  0x2c   : > { %347 = vperm.xlu2 %784, %v325_v25  }
  0x32   : > { %332 = vperm.xlu0 %782, %v322_v17   ;;  %337 = vperm.xlu1 %783, %v323_v18  }
  0x34   : > { %495 = vperm.xlu2 %784, %v489_v29  }
  0x37   : > { %729 = vmatmul.msk.bf16.gmra.mxu0 %vm390_vm0, %v752_v19 }
  0x38   : > { %733 = vmatmul.msk.bf16.gmra.mxu1 %vm390_vm0, %v752_v19 }
  0x3a   : > { %500 = vperm.xlu0 %782, %v490_v20   ;;  %505 = vperm.xlu1 %783, %v491_v21  }
  0x3c   : > { %510 = vperm.xlu2 %784, %v492_v30  }
  0x42   : > { %582 = vperm.xlu0 %782, %v576_v23   ;;  %587 = vperm.xlu1 %783, %v577_v24  }
  0x44   : > { %592 = vperm.xlu2 %784, %v578_v32  }
  0x47   : > { %730 = vmatmul.msk.bf16.gmra.mxu0 %vm390_vm0, %v753_v26 }
  0x48   : > { %734 = vmatmul.msk.bf16.gmra.mxu1 %vm390_vm0, %v753_v26 }
  0x4a   : > { %597 = vperm.xlu0 %782, %v579_v27   ;;  %629 = vperm.xlu1 %783, %v626_v28  }
  0x57   : > { %731 = vmatmul.msk.bf16.gmra.mxu0 %vm390_vm0, %v754_v31 }
  0x58   : > { %735 = vmatmul.msk.bf16.gmra.mxu1 %vm390_vm0, %v754_v31 }
  0x7e   : > { %v343_v47 = vpop.permute.xlu2 %342 }
  0x86   : > { %v348_v58 = vpop.permute.xlu2 %347 }
  0x94   : > { %v353_v45 = vpop.permute.xlu1 %352  ;;  %v363_v46 = vpop.permute.xlu0 %362 }
  0x9c   : > { %v358_v50 = vpop.permute.xlu1 %357  ;;  %v368_v51 = vpop.permute.xlu0 %367 }
  0xa4   : > { %v412_v33 = vpop.f32.mrf.mxu0  ;;  %v338_v6 = vpop.permute.xlu1 %337 }
  0xa5   : > { %v441_v34 = vpop.f32.mrf.mxu1  ;;  %v333_v14 = vpop.permute.xlu0 %332 }
  0xa6   : > { %v413_v21 = vadd.f32 %v412_v33, %v333_v14  ;;  %v442_v23 = vadd.f32 %v441_v34, %v333_v14  ;;  %v756_v33 = vld [vmem:[%s982_s3 + $0x8] sm:$0xff] }
  0xa8   : > { %v461_v29 = vmax.f32 %v413_v21, 0.0  ;;  %v462_v30 = vmax.f32 %v442_v23, 0.0 }
  0xac   : > { %v414_v35 = vpop.f32.mrf.mxu0 }
  0xad   : > { %v443_v36 = vpop.f32.mrf.mxu1  ;;  %v415_v15 = vadd.f32 %v414_v35, %v338_v6  ;;  %v755_v35 = vld [vmem:[%s982_s3] sm:$0xff] }
  0xae   : > { %v444_v18 = vadd.f32 %v443_v36, %v338_v6 }
  0xaf   : > { %v463_v25 = vmax.f32 %v415_v15, 0.0 }
  0xb0   : > { %v464_v27 = vmax.f32 %v444_v18, 0.0 }
  0xb1   : > { %v481_v31 = vpack.c.bf16 %v463_v25, %v461_v29 }
  0xb2   : > { %v482_v32 = vpack.c.bf16 %v464_v27, %v462_v30 }
  0xb4   : > { %v417_v37 = vpop.f32.mrf.mxu0 }
  0xb5   : > { %v446_v38 = vpop.f32.mrf.mxu1  ;;  %v418_v10 = vadd.f32 %v417_v37, %v343_v47  ;;  %v496_v37 = vpop.permute.xlu2 %495 }
  0xb6   : > { %v447_v12 = vadd.f32 %v446_v38, %v343_v47  ;;  %v501_v38 = vpop.permute.xlu0 %500 }
  0xb7   : > { %v465_v22 = vmax.f32 %v418_v10, 0.0 }
  0xb8   : > { %v466_v24 = vmax.f32 %v447_v12, 0.0 }
  0xbc   : > { %v419_v39 = vpop.f32.mrf.mxu0 }
  0xbd   : > { %v448_v40 = vpop.f32.mrf.mxu1  ;;  %v420_v3 = vadd.f32 %v419_v39, %v348_v58 }
  0xbe   : > { %v449_v7 = vadd.f32 %v448_v40, %v348_v58 }
  0xbf   : > { %v467_v16 = vmax.f32 %v420_v3, 0.0 }
  0xc0   : > { %v468_v19 = vmax.f32 %v449_v7, 0.0 }
  0xc1   : > { %v483_v26 = vpack.c.bf16 %v467_v16, %v465_v22 }
  0xc2   : > { %v484_v28 = vpack.c.bf16 %v468_v19, %v466_v24 }
  0xc4   : > { %v422_v41 = vpop.f32.mrf.mxu0 }
  0xc5   : > { %v451_v42 = vpop.f32.mrf.mxu1  ;;  %v423_v61 = vadd.f32 %v422_v41, %v353_v45  ;;  %v506_v41 = vpop.permute.xlu1 %505 }
  0xc6   : > { %v452_v0 = vadd.f32 %v451_v42, %v353_v45  ;;  %v511_v42 = vpop.permute.xlu2 %510 }
  0xc7   : > { %v469_v11 = vmax.f32 %v423_v61, 0.0 }
  0xc8   : > { %v470_v13 = vmax.f32 %v452_v0, 0.0 }
  0xcc   : > { %v424_v43 = vpop.f32.mrf.mxu0 }
  0xcd   : > { %v453_v44 = vpop.f32.mrf.mxu1  ;;  %v425_v55 = vadd.f32 %v424_v43, %v358_v50 }
  0xce   : > { %v454_v59 = vadd.f32 %v453_v44, %v358_v50 }
  0xcf   : > { %v471_v4 = vmax.f32 %v425_v55, 0.0 }
  0xd0   : > { %v472_v8 = vmax.f32 %v454_v59, 0.0 }
  0xd1   : > { %v485_v17 = vpack.c.bf16 %v471_v4, %v469_v11 }
  0xd2   : > { %v486_v20 = vpack.c.bf16 %v472_v8, %v470_v13 }
  0xd4   : > { %v427_v48 = vpop.f32.mrf.mxu0 }
  0xd5   : > { %v456_v49 = vpop.f32.mrf.mxu1  ;;  %v428_v52 = vadd.f32 %v427_v48, %v363_v46 }
  0xd6   : > { %v457_v53 = vadd.f32 %v456_v49, %v363_v46  ;;  %v583_v49 = vpop.permute.xlu0 %582 }
  0xd7   : > { %v473_v62 = vmax.f32 %v428_v52, 0.0 }
  0xd8   : > { %v474_v1 = vmax.f32 %v457_v53, 0.0 }
  0xdc   : > { %v429_v54 = vpop.f32.mrf.mxu0 }
  0xdd   : > { %v430_v56 = vadd.f32 %v429_v54, %v368_v51  ;;  %v458_v57 = vpop.f32.mrf.mxu1 }
  0xde   : > { %v459_v60 = vadd.f32 %v458_v57, %v368_v51  ;;  %v598_v8 = vpop.permute.xlu0 %597 }
  0xdf   : > { %v475_v63 = vmax.f32 %v430_v56, 0.0  ;;  %v588_v56 = vpop.permute.xlu1 %587 }
  0xe0   : > { %v476_v2 = vmax.f32 %v459_v60, 0.0  ;;  %v593_v60 = vpop.permute.xlu2 %592 }
  0xe1   : > { %v487_v5 = vpack.c.bf16 %v475_v63, %v473_v62 }
  0xe2   : > { %v488_v9 = vpack.c.bf16 %v476_v2, %v474_v1 }
  0xe3   : > { %534 = vmatpush.bf16.msra.mxu2 %v487_v5 }
  0xe4   : > { %553 = vmatpush.bf16.msra.mxu3 %v488_v9 }
  0xe7   : > { %535 = vmatpush.bf16.msra.mxu2 %v485_v17  ;;  %v630_v25 = vpop.permute.xlu1 %629 }
  0xe8   : > { %554 = vmatpush.bf16.msra.mxu3 %v486_v20 }
  0xeb   : > { %536 = vmatpush.bf16.msra.mxu2 %v483_v26 }
  0xec   : > { %555 = vmatpush.bf16.msra.mxu3 %v484_v28  ;;  %v632_v28 = vperm.slane %v630_v25, 0 }
  0xef   : > { %537 = vmatpush.bf16.msra.mxu2 %v481_v31  ;;  %v641_v31 = vlaneseq }
  0xf0   : > { %556 = vmatpush.bf16.msra.mxu3 %v482_v32 }
  0xf1   : > { %vm643_vm3 = vcmp.lt.s32.totalorder %v641_v31, 256 }
  0xf2   : > { %744 = vmatmul.msk.bf16.vlgmr.msra.gmra.mxu2 %vm523_vm1, %v755_v35 }
  0xf3   : > { %746 = vmatmul.msk.bf16.vlgmr.msra.gmra.mxu3 %vm523_vm1, %v755_v35 }
 0x102   : > { %745 = vmatmul.msk.bf16.gmra.mxu2 %vm523_vm1, %v756_v33 }
 0x103   : > { %747 = vmatmul.msk.bf16.gmra.mxu3 %vm523_vm1, %v756_v33 }
 0x175   : > { %v539_v34 = vpop.f32.mrf.mxu2 }
 0x176   : > { %v558_v36 = vpop.f32.mrf.mxu3  ;;  %v540_v46 = vadd.f32 %v539_v34, %v496_v37 }
 0x177   : > { %v559_v50 = vadd.f32 %v558_v36, %v496_v37 }
 0x178   : > { %v568_v54 = vmax.f32 %v540_v46, 0.0 }
 0x179   : > { %v569_v57 = vmax.f32 %v559_v50, 0.0 }
 0x17a   : > { %v600_v63 = vmul.f32 %v583_v49, %v568_v54 }
 0x17b   : > { %v601_v3 = vmul.f32 %v583_v49, %v569_v57 }
 0x17d   : > { %v541_v39 = vpop.f32.mrf.mxu2 }
 0x17e   : > { %v560_v40 = vpop.f32.mrf.mxu3  ;;  %v542_v43 = vadd.f32 %v541_v39, %v501_v38 }
 0x17f   : > { %v561_v44 = vadd.f32 %v560_v40, %v501_v38 }
 0x180   : > { %v570_v52 = vmax.f32 %v542_v43, 0.0 }
 0x181   : > { %v571_v53 = vmax.f32 %v561_v44, 0.0 }
 0x182   : > { %v602_v59 = vmul.f32 %v588_v56, %v570_v52 }
 0x183   : > { %v603_v61 = vmul.f32 %v588_v56, %v571_v53 }
 0x184   : > { %v608_v6 = vadd.f32 %v602_v59, %v600_v63 }
 0x185   : > { %v544_v45 = vpop.f32.mrf.mxu2  ;;  %v617_v9 = vadd.f32 %v603_v61, %v601_v3 }
 0x186   : > { %v545_v47 = vadd.f32 %v544_v45, %v506_v41  ;;  %v563_v48 = vpop.f32.mrf.mxu3 }
 0x187   : > { %v564_v51 = vadd.f32 %v563_v48, %v506_v41 }
 0x188   : > { %v572_v55 = vmax.f32 %v545_v47, 0.0 }
 0x189   : > { %v573_v58 = vmax.f32 %v564_v51, 0.0 }
 0x18a   : > { %v604_v0 = vmul.f32 %v593_v60, %v572_v55 }
 0x18b   : > { %v605_v4 = vmul.f32 %v593_v60, %v573_v58 }
 0x18c   : > { %v609_v11 = vadd.f32 %v608_v6, %v604_v0 }
 0x18d   : > { %v546_v62 = vpop.f32.mrf.mxu2  ;;  %v618_v13 = vadd.f32 %v617_v9, %v605_v4 }
 0x18e   : > { %v547_v1 = vadd.f32 %v546_v62, %v511_v42  ;;  %v565_v2 = vpop.f32.mrf.mxu3 }
 0x18f   : > { %v566_v5 = vadd.f32 %v565_v2, %v511_v42 }
 0x190   : > { %v574_v7 = vmax.f32 %v547_v1, 0.0 }
 0x191   : > { %v575_v10 = vmax.f32 %v566_v5, 0.0 }
 0x192   : > { %v606_v12 = vmul.f32 %v598_v8, %v574_v7 }
 0x193   : > { %v607_v14 = vmul.f32 %v598_v8, %v575_v10 }
 0x194   : > { %v610_v15 = vadd.f32 %v609_v11, %v606_v12 }
 0x195   : > { %v619_v16 = vadd.f32 %v618_v13, %v607_v14 }
 0x196   : > { %v611_v17 = vrot.slane %v610_v15, 4 }
 0x197   : > { %v620_v18 = vrot.slane %v619_v16, 4 }
 0x198   : > { %v612_v19 = vadd.f32 %v611_v17, %v610_v15 }
 0x199   : > { %v621_v20 = vadd.f32 %v620_v18, %v619_v16 }
 0x19a   : > { %v613_v21 = vrot.slane %v612_v19, 2 }
 0x19b   : > { %v622_v22 = vrot.slane %v621_v20, 2 }
 0x19c   : > { %v614_v23 = vadd.f32 %v613_v21, %v612_v19 }
 0x19d   : > { %v623_v24 = vadd.f32 %v622_v22, %v621_v20 }
 0x19e   : > { %v615_v26 = vrot.slane %v614_v23, 1 }
 0x19f   : > { %v624_v27 = vrot.slane %v623_v24, 1 }
 0x1a0   : > { %v616_v29 = vadd.f32 %v615_v26, %v614_v23 }
 0x1a1   : > { %v625_v30 = vadd.f32 %v624_v27, %v623_v24 }
 0x1a2   : > { %v633_v35 = vadd.f32 %v632_v28, %v616_v29 }
 0x1a3   : > { %v634_v32 = vadd.f32 %v632_v28, %v625_v30 }
 0x1a5   : > { %v637_v33 = vrot.slane %v634_v32, 7 }
 0x1a7   : > { %v639_v34 = vsel %vm638_vm2, %v633_v35, %v637_v33 }
 0x1a8   : > { %645 = vst.msk [vmem:[%s305_s28] sm:$0x3] %vm643_vm3, %v639_v34 }
 0x1a9 PF: > { %p16_p9 = scmp.ge.s32.totalorder %s870_s29, 6   ;;  %s987_s26 = smov %s803_s27 }
 0x1aa   : > { %s988_s27 = smov %s879_s9  ;;  %s989_s28 = smov %s870_s29 }
 0x1ab   :  { %18 = sbr.rel (!%p16_p9) target bundleno = 5 (0x5), region = 106 }

</bundles_post_ra>
